<compile_context>
chip_gen: v7x
topology: tpu7x:2x2x1
jax: 0.10.0
libtpu: 0.0.40
codegen_flags: <defaults>
</compile_context>

<pallas_src>
import jax
import jax.numpy as jnp
from jax.experimental import pallas as pl
from jax.experimental.pallas import tpu as pltpu


def _normalize_kernel(x_ref, param_ref, o_ref):
    # x_ref / o_ref: (row_tile, lane_tile) VMEM tiles.
    # param_ref: (2, row_tile, 1) VMEM tile; [0] = scale rows, [1] = bias rows.
    scale = param_ref[0]  # (row_tile, 1), broadcast over lanes
    bias = param_ref[1]   # (row_tile, 1)
    o_ref[...] = (x_ref[...] * scale + bias).astype(o_ref.dtype)


def _round_down_multiple(x, m):
    return (x // m) * m


def _choose_tiles(R, L, itemsize, budget_bytes):
    """Pick (row_tile, lane_tile) near budget; ragged edges handled by cdiv grid."""
    row_unit = 8 if R >= 8 else max(R, 1)      # sublane alignment (or full dim)
    lane_unit = 128 if L >= 128 else max(L, 1)  # lane alignment (or full dim)

    if L * row_unit * itemsize <= budget_bytes:
        # Full spatial extent fits for at least one row-unit slab.
        lane_tile = L
        max_rows = budget_bytes // (lane_tile * itemsize)
        row_tile = min(R, max(row_unit, _round_down_multiple(max_rows, row_unit)))
    else:
        # Very large H*W: minimal row slab, split along lanes.
        row_tile = row_unit if R >= 8 else R
        max_lanes = budget_bytes // (max(row_tile, 1) * itemsize)
        lane_tile = min(L, max(lane_unit, _round_down_multiple(max_lanes, lane_unit)))

    # For large tensors, ensure >= 4 grid steps (2 TensorCores x double buffer).
    total_bytes = R * L * itemsize
    if total_bytes >= (4 << 20):
        while pl.cdiv(R, row_tile) * pl.cdiv(L, lane_tile) < 4:
            if row_tile >= 2 * row_unit:
                row_tile = max(row_unit, _round_down_multiple(row_tile // 2, row_unit))
            elif lane_tile >= 2 * lane_unit:
                lane_tile = max(lane_unit, _round_down_multiple(lane_tile // 2, lane_unit))
            else:
                break

    return row_tile, lane_tile


def normalize(x, mean, std, *, block_budget_bytes=4 << 20, donate_input=False):
    """x: (N, C, H, W); mean, std: (C,). Returns (x - mean[c]) / std[c] per channel."""
    N, C, H, W = x.shape
    R = N * C          # rows after flattening
    L = H * W          # lane-dense spatial extent
    itemsize = jnp.dtype(x.dtype).itemsize

    mean = jnp.asarray(mean, dtype=jnp.float32)
    std = jnp.asarray(std, dtype=jnp.float32)
    inv_std = 1.0 / std

    # Per-row affine parameters: row r = n*C + c -> scale=1/std[c], bias=-mean[c]/std[c].
    scale_rows = jnp.tile(inv_std, N).reshape(R, 1)
    bias_rows = jnp.tile(-mean * inv_std, N).reshape(R, 1)
    params = jnp.stack([scale_rows, bias_rows], axis=0)  # (2, R, 1)

    x2 = x.reshape(R, L)

    row_tile, lane_tile = _choose_tiles(R, L, itemsize, block_budget_bytes)
    grid = (pl.cdiv(R, row_tile), pl.cdiv(L, lane_tile))  # lane axis j is fastest

    # Double-buffered 2x(in block) + 2x(out block) + small aux + headroom,
    # clamped so it stays comfortably inside v7x's 64 MiB physical VMEM while
    # exceeding v5e's 16 MiB scoped default when needed.
    block_bytes = row_tile * lane_tile * itemsize
    vmem_limit = int(min(max(4 * block_bytes + (4 << 20), 16 << 20), 30 << 20))

    grid_spec = pltpu.PrefetchScalarGridSpec(
        num_scalar_prefetch=0,
        grid=grid,
        in_specs=[
            pl.BlockSpec((row_tile, lane_tile), lambda i, j: (i, j)),
            # Constant in j -> params are not re-fetched across the lane sweep.
            pl.BlockSpec((2, row_tile, 1), lambda i, j: (0, i, 0)),
        ],
        out_specs=pl.BlockSpec((row_tile, lane_tile), lambda i, j: (i, j)),
    )

    cost = pl.CostEstimate(
        flops=2 * R * L,
        transcendentals=0,
        bytes_accessed=2 * R * L * itemsize + 2 * R * 4,
    )

    out2 = pl.pallas_call(
        _normalize_kernel,
        out_shape=jax.ShapeDtypeStruct((R, L), x.dtype),
        grid_spec=grid_spec,
        compiler_params=pltpu.CompilerParams(
            dimension_semantics=("parallel", "parallel"),
            vmem_limit_bytes=vmem_limit,
        ),
        cost_estimate=cost,
        # Only alias when the caller promises not to reuse `x`.
        input_output_aliases=({0: 0} if donate_input else {}),
    )(x2, params)

    return out2.reshape(N, C, H, W)


if __name__ == "__main__":
    # Deterministic parameters (ImageNet-style normalization constants).
    mean = jnp.array([0.485, 0.456, 0.406], dtype=jnp.float32)
    std = jnp.array([0.229, 0.224, 0.225], dtype=jnp.float32)

    # Small deterministic input, NCHW with 3 channels (module assumes C=3).
    key = jax.random.PRNGKey(0)
    x = jax.random.uniform(key, (2, 3, 16, 16), dtype=jnp.float32)

    out = normalize(x, mean, std)
    out = jax.block_until_ready(out)

    # Reference check against plain JAX broadcasting semantics.
    ref = (x - mean.reshape(1, 3, 1, 1)) / std.reshape(1, 3, 1, 1)
    assert out.shape == ref.shape and out.dtype == ref.dtype
    # Reciprocal-multiply + FMA differs from true divide by ~1-2 ulp per element.
    assert jnp.allclose(out, ref, atol=1e-5, rtol=1e-5)

    print("KERNEL_OK")
</pallas_src>

<mosaic_0001>
module attributes {stable_mosaic.version = 11 : i64} {
  func.func @_normalize_kernel(%arg0: i32, %arg1: i32, %arg2: memref<6x256xf32, #tpu.memory_space<vmem>>, %arg3: memref<2x6x1xf32, #tpu.memory_space<vmem>>, %arg4: memref<6x256xf32, #tpu.memory_space<vmem>>) attributes {dimension_semantics = [#tpu.dimension_semantics<parallel>, #tpu.dimension_semantics<parallel>], iteration_bounds = array<i64: 1, 1>, scalar_prefetch = 0 : i64, scratch_operands = 0 : i64, tpu.core_type = #tpu.core_type<tc>, window_params = [{transform_indices = @transform_0, window_bounds = array<i64: 6, 256>}, {transform_indices = @transform_1, window_bounds = array<i64: 2, 6, 1>}, {transform_indices = @transform_2, window_bounds = array<i64: 6, 256>}]} {
    %c0 = arith.constant 0 : index
    %c0_0 = arith.constant 0 : index
    %c0_1 = arith.constant 0 : index
    %0 = vector.load %arg3[%c0, %c0_0, %c0_1] : memref<2x6x1xf32, #tpu.memory_space<vmem>>, vector<1x6x1xf32>
    %1 = vector.shape_cast %0 : vector<1x6x1xf32> to vector<6x1xf32>
    %c1 = arith.constant 1 : index
    %c0_2 = arith.constant 0 : index
    %c0_3 = arith.constant 0 : index
    %2 = vector.load %arg3[%c1, %c0_2, %c0_3] : memref<2x6x1xf32, #tpu.memory_space<vmem>>, vector<1x6x1xf32>
    %3 = vector.shape_cast %2 : vector<1x6x1xf32> to vector<6x1xf32>
    %c0_4 = arith.constant 0 : index
    %c0_5 = arith.constant 0 : index
    %4 = vector.load %arg2[%c0_4, %c0_5] : memref<6x256xf32, #tpu.memory_space<vmem>>, vector<6x256xf32>
    %5 = vector.broadcast %1 : vector<6x1xf32> to vector<6x256xf32>
    %6 = arith.mulf %4, %5 : vector<6x256xf32>
    %7 = vector.broadcast %3 : vector<6x1xf32> to vector<6x256xf32>
    %8 = arith.addf %6, %7 : vector<6x256xf32>
    %c0_6 = arith.constant 0 : index
    %c0_7 = arith.constant 0 : index
    %9 = vector.load %arg4[%c0_6, %c0_7] : memref<6x256xf32, #tpu.memory_space<vmem>>, vector<6x256xf32>
    tpu.vector_store %arg4[%c0_6, %c0_7], %8 {strides = array<i32>} : memref<6x256xf32, #tpu.memory_space<vmem>>, vector<6x256xf32>,
    return
  }
  func.func @transform_0(%arg0: i32, %arg1: i32) -> (i32, i32) {
    %c0_i32 = arith.constant 0 : i32
    return %arg0, %arg1 : i32, i32
  }
  func.func @transform_1(%arg0: i32, %arg1: i32) -> (i32, i32, i32) {
    %c0_i32 = arith.constant 0 : i32
    %c0_i32_0 = arith.constant 0 : i32
    %c0_i32_1 = arith.constant 0 : i32
    return %c0_i32, %arg0, %c0_i32_0 : i32, i32, i32
  }
  func.func @transform_2(%arg0: i32, %arg1: i32) -> (i32, i32) {
    %c0_i32 = arith.constant 0 : i32
    return %arg0, %arg1 : i32, i32
  }
}

</mosaic_0001>

<bundles_post_ra>
// kernel: tpu_custom_call.1
= control target key start
LH: loop header
LB: loop body
LE: loop exit
PB: predicated region body
PF: predicated region fallthrough
CT: control target
= control target key end

     0   :  { %v75_v1 = vmov 0   ;;  %s116_s0 = inlined_call_operand.vmem [shape: f32[6,256], index: 0, kind: input, shape index: {}]   ;;  %s117_s1 = inlined_call_operand.vmem [shape: f32[2,6,1], index: 1, kind: input, shape index: {}]   ;;  %s118_s2 = inlined_call_operand.hbm [shape: f32[6,256], index: 2, kind: output, shape index: {}]  }
   0x1   :  { %v12_v0 = vld [vmem:[%s117_s1] sm:$0x3f]  ;;  %50 = vset.pattern.permute.xlu0 %v75_v1 }
   0x2   :  { %7 = vsyncpa [#allocation3], 0  ;;  %19 = vperm.xlu0 %50, %v12_v0   ;;  %v47_v2 = vld [vmem:[%s117_s1 + $0x8] sm:$0x3f]  ;;  %v15_v3 = vld [vmem:[%s116_s0] sm:$0x3f] }
   0x3   :  { %v16_v4 = vld [vmem:[%s116_s0 + $0x8] sm:$0x3f]  ;;  %s76_s17 = smov [#allocation2]  }
   0x4   :  { %s39_s18 = sshll.u32 %s76_s17, 4  ;;  %s40_s18 = int_to_ptr.vmem [resolvable:$true] %s39_s18 }
   0x5   :  { %s51_s1 = scalar_lea.vmem %s40_s18, 256  ;;  %p56_p1 = scmp.lt.s32.totalorder %s40_s18, %s40_s18 }
   0x6   :  { %26 = vperm.xlu0 %50, %v47_v2   ;;  %p52_p0 = scmp.ne.s32.totalorder %s40_s18, %s51_s1  ;;  %p57_p2 = scmp.lt.s32.totalorder %s51_s1, %s51_s1 }
   0x8   :  { %p58_p3 = por %p57_p2, %p56_p1 }
   0xa   :  { %p59_p4 = pnand %p58_p3, %p52_p0 }
  0x81   :  { %v20_v5 = vpop.permute.xlu0 %19 }
  0x82   :  { %v22_v6 = vmul.f32 %v20_v5, %v15_v3  ;;  %v23_v7 = vmul.f32 %v20_v5, %v16_v4 }
  0x85   :  { %v27_v8 = vpop.permute.xlu0 %26 }
  0x86   :  { %v29_v9 = vadd.f32 %v27_v8, %v22_v6  ;;  %v30_v10 = vadd.f32 %v27_v8, %v23_v7 }
  0x88   :  { %31 = vst [vmem:[#allocation2] sm:$0x3f] %v29_v9  ;;  %32 = vst [vmem:[#allocation2 + $0x8] sm:$0x3f] %v30_v10 }
  0x89   :  { %62 = shalt.err (!%p59_p4)
}
  0x8a   :  { %s63_s20 = scalar_lea.hbm %s118_s2, 256 }
  0x8b   :  { %p64_p5 = scmp.ne.s32.totalorder %s118_s2, %s63_s20  ;;  %p67_p6 = scmp.lt.u32.totalorder %s63_s20, %s118_s2 }
  0x8d   :  { %p69_p7 = pnand %p67_p6, %p64_p5 }
  0x8f   :  { %72 = shalt.err (!%p69_p7)
}
  0x90   :  { %42 = dma.vmem_to_hbm [thread:$0]  %s40_s18, 256, %s118_s2, [#allocation3]  }
  0x91   :  { %73 = dma.done.wait [#allocation3], 256  }
  0x92   :  { %74 = vsyncadd [#allocation3], 4294967040 }
  0x93   :  { %46 = vsyncpa [#allocation3], 1 }

</bundles_post_ra>
